<compile_context>
chip_gen: v7x
topology: tpu7x:2x2x1
jax: 0.10.0
libtpu: 0.0.40
codegen_flags: <defaults>
</compile_context>

<pallas_src>
import functools

import jax
import jax.numpy as jnp
from jax.experimental import pallas as pl
from jax.experimental.pallas import tpu as pltpu


# --------------------------------------------------------------------------- #
# Kernels
# --------------------------------------------------------------------------- #
def _maxpool2d_kernel(x_ref, out_ref, idx_ref, *, ksize, stride, in_w):
    """x_ref: (1, th_in, W, c_blk) NHWC block; out/idx: (1, th, Wo, c_blk)."""
    th = out_ref.shape[1]
    wo = out_ref.shape[2]
    oshape = out_ref.shape
    s = stride
    is_float = jnp.issubdtype(out_ref.dtype, jnp.floating)

    def window(di, dj):
        # dim 1 (rows) is an outer dim, dim 2 (W) is the sublane dim; both
        # strided loads are natively supported. Lane (channel) dim untouched.
        return x_ref[:, pl.ds(di, th, stride=s), pl.ds(dj, wo, stride=s), :]

    best = window(0, 0)
    off = jnp.zeros(oshape, jnp.int32)        # per-window offset di*W + dj
    for di in range(ksize):
        for dj in range(ksize):
            if di == 0 and dj == 0:
                continue
            cand = window(di, dj)
            take = cand > best
            if is_float:
                take = take | jnp.isnan(cand)  # PyTorch semantics: NaN wins
            off = jnp.where(take, jnp.int32(di * in_w + dj), off)
            best = jnp.where(take, cand, best)

    out_ref[...] = best

    # Flattened H*W base index of each window's top-left element. Computed
    # AFTER the unrolled k*k loop so the int32 blocks are not live during it.
    row0 = pl.program_id(2) * th
    oi = jax.lax.broadcasted_iota(jnp.int32, oshape, 1) + row0   # global out row
    oj = jax.lax.broadcasted_iota(jnp.int32, oshape, 2)          # global out col
    idx_ref[...] = (oi * s) * in_w + oj * s + off


def _maxpool2d_kernel_values(x_ref, out_ref, *, ksize, stride):
    """Values-only variant: no index output, no iota math."""
    th = out_ref.shape[1]
    wo = out_ref.shape[2]
    s = stride

    def window(di, dj):
        return x_ref[:, pl.ds(di, th, stride=s), pl.ds(dj, wo, stride=s), :]

    best = window(0, 0)
    for di in range(ksize):
        for dj in range(ksize):
            if di == 0 and dj == 0:
                continue
            best = jnp.maximum(best, window(di, dj))   # NaN propagates (PyTorch)
    out_ref[...] = best


# --------------------------------------------------------------------------- #
# Tiling
# --------------------------------------------------------------------------- #
@functools.lru_cache(maxsize=None)
def _vmem_capacity_bytes():
    try:
        return int(pltpu.get_tpu_info().vmem_capacity_bytes)
    except Exception:
        return 64 * 1024 * 1024  # conservative fallback (v7x-sized)


def _choose_tiles(N, W, C, Ho, Wo, ksize, stride, itemsize, with_indices,
                  tile_h, budget):
    """Pick (c_blk, th, th_in): channel tile, output-row tile, input-row rows."""

    def th_in_rows(th):
        # Non-overlapping windows keep the proven Blocked tiling (th*stride
        # rows); overlapping windows use halo tiles of (th-1)*stride + k rows.
        return th * stride if ksize <= stride else (th - 1) * stride + ksize

    def dbuf_bytes(th, cb):
        blk_in = th_in_rows(th) * W * cb * itemsize
        blk_out = th * Wo * cb * itemsize
        blk_idx = th * Wo * cb * 4 if with_indices else 0
        return 2 * (blk_in + blk_out + blk_idx)   # double-buffered blocks

    # Channel tile: largest multiple of 128 dividing C whose minimal (th=1)
    # double-buffered block still fits the budget (longer contiguous DMA runs,
    # fewer grid steps). C < 128 stays lane-sparse.
    # TODO(synk): for C < 128 (e.g. early CNN layers), a lane-dense W*C layout
    # with pltpu.roll-generated dj candidates would eliminate masked stores;
    # not implemented here.
    c_blk = C
    if C % 128 == 0:
        c_blk = 128
        for g in sorted({m for m in range(128, C + 1, 128) if C % m == 0},
                        reverse=True):
            if dbuf_bytes(1, g) <= budget:
                c_blk = g
                break

    # Row tile: largest divisor of Ho fitting the budget, but keep >= 2 total
    # grid points when possible so both v7x TensorCores get work.
    n_outer = N * (C // c_blk)
    min_row_tiles = 1 if n_outer >= 2 else min(2, Ho)
    divisors = [d for d in range(Ho, 0, -1) if Ho % d == 0]
    if tile_h is not None:
        divisors = [d for d in divisors if d <= tile_h] or [1]
    th = 1
    for d in divisors:
        if Ho // d < min_row_tiles:
            continue
        if dbuf_bytes(d, c_blk) <= budget:
            th = d
            break
    return c_blk, th, th_in_rows(th)


# --------------------------------------------------------------------------- #
# pallas_call wrapper
# --------------------------------------------------------------------------- #
def _maxpool2d_nhwc_impl(x_nhwc, kernel_size, stride, tile_h, with_indices):
    # PyTorch convention: stride falls back to kernel_size when not given.
    if stride is None or stride == 0:
        s = kernel_size
    elif stride < 0:
        raise ValueError("stride must be positive (or 0 meaning 'use kernel_size')")
    else:
        s = stride
    k = kernel_size

    N, H, W, C = x_nhwc.shape
    Ho = (H - k) // s + 1
    Wo = (W - k) // s + 1
    if Ho <= 0 or Wo <= 0:
        raise ValueError("pooling window larger than input")

    # Generation-aware VMEM budget + explicit scoped-VMEM claim.
    cap = _vmem_capacity_bytes()                     # 128 MiB v5e/v6e, 64 MiB v7x
    vmem_limit = int(cap * 0.75)                     # ~96 MiB / ~48 MiB
    vmem_limit = max(32 * 1024 * 1024, min(vmem_limit, 112 * 1024 * 1024))
    budget = int(vmem_limit * 0.8)                   # headroom for temps/scratch

    c_blk, th, th_in = _choose_tiles(
        N, W, C, Ho, Wo, k, s, jnp.dtype(x_nhwc.dtype).itemsize,
        with_indices, tile_h, budget)
    grid = (N, C // c_blk, Ho // th)

    if k <= s:
        # Non-overlapping windows: plain Blocked row tiles (offset hi * th_in).
        in_spec = pl.BlockSpec((1, th_in, W, c_blk),
                               lambda n, ci, hi: (n, hi, 0, ci))
    else:
        # Overlapping windows: halo row tiles. The row dim uses pl.Element so
        # the index_map returns an element offset (consecutive tiles overlap
        # by k - s rows); double-buffered pipelining is preserved and only the
        # halo rows are re-read from HBM.
        row_step = th * s
        in_spec = pl.BlockSpec(
            (1, pl.Element(th_in), W, c_blk),
            lambda n, ci, hi, rs=row_step: (n, hi * rs, 0, ci))

    out_block = pl.BlockSpec((1, th, Wo, c_blk), lambda n, ci, hi: (n, hi, 0, ci))
    compiler_params = pltpu.CompilerParams(
        dimension_semantics=("parallel", "parallel", "parallel"),
        vmem_limit_bytes=vmem_limit)

    if with_indices:
        kern = functools.partial(_maxpool2d_kernel, ksize=k, stride=s, in_w=W)
        out_shape = (jax.ShapeDtypeStruct((N, Ho, Wo, C), x_nhwc.dtype),
                     jax.ShapeDtypeStruct((N, Ho, Wo, C), jnp.int32))
        out_specs = (out_block, out_block)
    else:
        kern = functools.partial(_maxpool2d_kernel_values, ksize=k, stride=s)
        out_shape = jax.ShapeDtypeStruct((N, Ho, Wo, C), x_nhwc.dtype)
        out_specs = out_block

    return pl.pallas_call(
        kern,
        out_shape=out_shape,
        grid=grid,
        in_specs=[in_spec],
        out_specs=out_specs,
        compiler_params=compiler_params,
    )(x_nhwc)


@functools.partial(jax.jit, static_argnums=(1, 2, 3))
def maxpool2d_with_indices_nhwc(x_nhwc, kernel_size, stride=0, tile_h=None):
    """Transpose-free entry point (preferred): NHWC in, (pooled, int32 idx) out."""
    return _maxpool2d_nhwc_impl(x_nhwc, kernel_size, stride, tile_h, True)


@functools.partial(jax.jit, static_argnums=(1, 2, 3))
def maxpool2d_nhwc(x_nhwc, kernel_size, stride=0, tile_h=None):
    """Values-only NHWC variant: skips the int32 index write (less HBM traffic)."""
    return _maxpool2d_nhwc_impl(x_nhwc, kernel_size, stride, tile_h, False)


@functools.partial(jax.jit, static_argnums=(1, 2, 3))
def maxpool2d_with_indices(x_nchw, kernel_size, stride=0, tile_h=None):
    """PyTorch-parity NCHW interface (indices are int32, PyTorch returns int64).

    # TODO(synk): the NCHW<->NHWC transposes are two extra full HBM passes;
    # keep the surrounding model NHWC and call the *_nhwc entry points to avoid
    # them (a transpose-free NCHW kernel needs a lane-dense W*C layout).
    """
    x_nhwc = jnp.transpose(x_nchw, (0, 2, 3, 1))
    out_nhwc, idx_nhwc = _maxpool2d_nhwc_impl(
        x_nhwc, kernel_size, stride, tile_h, True)
    out = jnp.transpose(out_nhwc, (0, 3, 1, 2))
    idx = jnp.transpose(idx_nhwc, (0, 3, 1, 2))
    return out, idx


class MaxPool2dA:
    """JAX/Pallas mirror of the PyTorch module (no learnable parameters)."""

    def __init__(self, kernel_size, stride=0):
        self.kernel_size = kernel_size
        self.stride = stride
        self.indices = None  # int32 flattened h*W + w indices.

    def __call__(self, x):  # x: NCHW, like the PyTorch module
        out, idx = maxpool2d_with_indices(x, self.kernel_size, self.stride)
        self.indices = idx
        return out


# --------------------------------------------------------------------------- #
# Self-test
# --------------------------------------------------------------------------- #
if __name__ == "__main__":
    key = jax.random.PRNGKey(0)
    N, C, H, W = 2, 4, 16, 16
    x = jax.random.normal(key, (N, C, H, W), dtype=jnp.float32)

    def check_nchw(xv, ksize, stride, tile_h=None):
        n, c, h, w = xv.shape
        s = ksize if (stride is None or stride == 0) else stride
        out, idx = maxpool2d_with_indices(xv, ksize, stride, tile_h)
        out = jax.block_until_ready(out)
        idx = jax.block_until_ready(idx)
        ref = jax.lax.reduce_window(
            xv, -jnp.inf, jax.lax.max,
            window_dimensions=(1, 1, ksize, ksize),
            window_strides=(1, 1, s, s), padding="VALID")
        assert out.shape == ref.shape, (out.shape, ref.shape)
        assert jnp.allclose(out, ref), "pooled values mismatch"
        gathered = jnp.take_along_axis(
            xv.reshape(n, c, h * w), idx.reshape(n, c, -1), axis=-1
        ).reshape(out.shape)
        assert jnp.allclose(gathered, out), "indices mismatch"
        return out, idx

    # Module path (matches the PyTorch usage: 2x2 pooling, stride 2).
    mod = MaxPool2dA(kernel_size=2, stride=2)
    out_mod = jax.block_until_ready(mod(x))
    idx_mod = jax.block_until_ready(mod.indices)
    out_fn, idx_fn = check_nchw(x, 2, 2)
    assert out_mod.shape == (N, C, H // 2, W // 2)
    assert jnp.allclose(out_mod, out_fn) and jnp.array_equal(idx_mod, idx_fn)

    # Multi-tile grid along output rows (Blocked row tiles, row0 offset math).
    check_nchw(x, 2, 2, tile_h=2)

    # Overlapping windows (stride < kernel): pl.Element halo row tiles.
    check_nchw(x, 3, 2)
    check_nchw(x, 3, 2, tile_h=1)

    # Values-only NHWC fast path (no index write traffic).
    x_nhwc = jnp.transpose(x, (0, 2, 3, 1))
    out_v = jax.block_until_ready(maxpool2d_nhwc(x_nhwc, 2, 2))
    ref_v = jax.lax.reduce_window(
        x_nhwc, -jnp.inf, jax.lax.max,
        window_dimensions=(1, 2, 2, 1), window_strides=(1, 2, 2, 1),
        padding="VALID")
    assert jnp.allclose(out_v, ref_v), "values-only path mismatch"

    print("KERNEL_OK")
</pallas_src>

<mosaic_0001>
module attributes {stable_mosaic.version = 11 : i64} {
  func.func @_maxpool2d_kernel(%arg0: i32, %arg1: i32, %arg2: i32, %arg3: memref<1x16x16x4xf32, #tpu.memory_space<vmem>>, %arg4: memref<1x8x8x4xf32, #tpu.memory_space<vmem>>, %arg5: memref<1x8x8x4xi32, #tpu.memory_space<vmem>>) attributes {dimension_semantics = [#tpu.dimension_semantics<parallel>, #tpu.dimension_semantics<parallel>, #tpu.dimension_semantics<parallel>], iteration_bounds = array<i64: 2, 1, 1>, scalar_prefetch = 0 : i64, scratch_operands = 0 : i64, tpu.core_type = #tpu.core_type<tc>, window_params = [{transform_indices = @transform_0, window_bounds = array<i64: 1, 16, 16, 4>}, {transform_indices = @transform_1, window_bounds = array<i64: 1, 8, 8, 4>}, {transform_indices = @transform_2, window_bounds = array<i64: 1, 8, 8, 4>}]} {
    %c0 = arith.constant 0 : index
    %c0_0 = arith.constant 0 : index
    %c0_1 = arith.constant 0 : index
    %c0_2 = arith.constant 0 : index
    %0 = tpu.strided_load %arg3[%c0, %c0_0, %c0_1, %c0_2] {strides = array<i32: 1, 2, 2, 1>} : memref<1x16x16x4xf32, #tpu.memory_space<vmem>>, vector<1x8x8x4xf32>
    %c0_i32 = arith.constant 0 : i32
    %1 = vector.broadcast %c0_i32 : i32 to vector<1x8x8x4xi32>
    %c0_3 = arith.constant 0 : index
    %c0_4 = arith.constant 0 : index
    %c1 = arith.constant 1 : index
    %c0_5 = arith.constant 0 : index
    %2 = tpu.strided_load %arg3[%c0_3, %c0_4, %c1, %c0_5] {strides = array<i32: 1, 2, 2, 1>} : memref<1x16x16x4xf32, #tpu.memory_space<vmem>>, vector<1x8x8x4xf32>
    %3 = arith.cmpf ogt, %2, %0 : vector<1x8x8x4xf32>
    %4 = arith.cmpf one, %2, %2 : vector<1x8x8x4xf32>
    %5 = arith.ori %3, %4 : vector<1x8x8x4xi1>
    %c1_i32 = arith.constant 1 : i32
    %6 = vector.broadcast %c1_i32 : i32 to vector<1x8x8x4xi32>
    %7 = arith.select %5, %6, %1 : vector<1x8x8x4xi1>, vector<1x8x8x4xi32>
    %8 = arith.select %5, %2, %0 : vector<1x8x8x4xi1>, vector<1x8x8x4xf32>
    %c0_6 = arith.constant 0 : index
    %c1_7 = arith.constant 1 : index
    %c0_8 = arith.constant 0 : index
    %c0_9 = arith.constant 0 : index
    %9 = tpu.strided_load %arg3[%c0_6, %c1_7, %c0_8, %c0_9] {strides = array<i32: 1, 2, 2, 1>} : memref<1x16x16x4xf32, #tpu.memory_space<vmem>>, vector<1x8x8x4xf32>
    %10 = arith.cmpf ogt, %9, %8 : vector<1x8x8x4xf32>
    %11 = arith.cmpf one, %9, %9 : vector<1x8x8x4xf32>
    %12 = arith.ori %10, %11 : vector<1x8x8x4xi1>
    %c16_i32 = arith.constant 16 : i32
    %13 = vector.broadcast %c16_i32 : i32 to vector<1x8x8x4xi32>
    %14 = arith.select %12, %13, %7 : vector<1x8x8x4xi1>, vector<1x8x8x4xi32>
    %15 = arith.select %12, %9, %8 : vector<1x8x8x4xi1>, vector<1x8x8x4xf32>
    %c0_10 = arith.constant 0 : index
    %c1_11 = arith.constant 1 : index
    %c1_12 = arith.constant 1 : index
    %c0_13 = arith.constant 0 : index
    %16 = tpu.strided_load %arg3[%c0_10, %c1_11, %c1_12, %c0_13] {strides = array<i32: 1, 2, 2, 1>} : memref<1x16x16x4xf32, #tpu.memory_space<vmem>>, vector<1x8x8x4xf32>
    %17 = arith.cmpf ogt, %16, %15 : vector<1x8x8x4xf32>
    %18 = arith.cmpf one, %16, %16 : vector<1x8x8x4xf32>
    %19 = arith.ori %17, %18 : vector<1x8x8x4xi1>
    %c17_i32 = arith.constant 17 : i32
    %20 = vector.broadcast %c17_i32 : i32 to vector<1x8x8x4xi32>
    %21 = arith.select %19, %20, %14 : vector<1x8x8x4xi1>, vector<1x8x8x4xi32>
    %22 = arith.select %19, %16, %15 : vector<1x8x8x4xi1>, vector<1x8x8x4xf32>
    %c0_14 = arith.constant 0 : index
    %c0_15 = arith.constant 0 : index
    %c0_16 = arith.constant 0 : index
    %c0_17 = arith.constant 0 : index
    %23 = vector.load %arg4[%c0_14, %c0_15, %c0_16, %c0_17] : memref<1x8x8x4xf32, #tpu.memory_space<vmem>>, vector<1x8x8x4xf32>
    tpu.vector_store %arg4[%c0_14, %c0_15, %c0_16, %c0_17], %22 {strides = array<i32>} : memref<1x8x8x4xf32, #tpu.memory_space<vmem>>, vector<1x8x8x4xf32>,
    %c8_i32 = arith.constant 8 : i32
    %24 = arith.muli %arg2, %c8_i32 : i32
    %25 = tpu.iota {dimensions = array<i32: 1>} : vector<1x8x8x4xi32>
    %26 = vector.broadcast %24 : i32 to vector<1x8x8x4xi32>
    %27 = arith.addi %25, %26 : vector<1x8x8x4xi32>
    %28 = tpu.iota {dimensions = array<i32: 2>} : vector<1x8x8x4xi32>
    %c2_i32 = arith.constant 2 : i32
    %29 = vector.broadcast %c2_i32 : i32 to vector<1x8x8x4xi32>
    %30 = arith.muli %27, %29 : vector<1x8x8x4xi32>
    %c16_i32_18 = arith.constant 16 : i32
    %31 = vector.broadcast %c16_i32_18 : i32 to vector<1x8x8x4xi32>
    %32 = arith.muli %30, %31 : vector<1x8x8x4xi32>
    %c2_i32_19 = arith.constant 2 : i32
    %33 = vector.broadcast %c2_i32_19 : i32 to vector<1x8x8x4xi32>
    %34 = arith.muli %28, %33 : vector<1x8x8x4xi32>
    %35 = arith.addi %32, %34 : vector<1x8x8x4xi32>
    %36 = arith.addi %35, %21 : vector<1x8x8x4xi32>
    %c0_20 = arith.constant 0 : index
    %c0_21 = arith.constant 0 : index
    %c0_22 = arith.constant 0 : index
    %c0_23 = arith.constant 0 : index
    %37 = vector.load %arg5[%c0_20, %c0_21, %c0_22, %c0_23] : memref<1x8x8x4xi32, #tpu.memory_space<vmem>>, vector<1x8x8x4xi32>
    tpu.vector_store %arg5[%c0_20, %c0_21, %c0_22, %c0_23], %36 {strides = array<i32>} : memref<1x8x8x4xi32, #tpu.memory_space<vmem>>, vector<1x8x8x4xi32>,
    return
  }
  func.func @transform_0(%arg0: i32, %arg1: i32, %arg2: i32) -> (i32, i32, i32, i32) {
    %c0_i32 = arith.constant 0 : i32
    %c0_i32_0 = arith.constant 0 : i32
    return %arg0, %arg2, %c0_i32, %arg1 : i32, i32, i32, i32
  }
  func.func @transform_1(%arg0: i32, %arg1: i32, %arg2: i32) -> (i32, i32, i32, i32) {
    %c0_i32 = arith.constant 0 : i32
    %c0_i32_0 = arith.constant 0 : i32
    return %arg0, %arg2, %c0_i32, %arg1 : i32, i32, i32, i32
  }
  func.func @transform_2(%arg0: i32, %arg1: i32, %arg2: i32) -> (i32, i32, i32, i32) {
    %c0_i32 = arith.constant 0 : i32
    %c0_i32_0 = arith.constant 0 : i32
    return %arg0, %arg2, %c0_i32, %arg1 : i32, i32, i32, i32
  }
}

</mosaic_0001>

<bundles_post_ra>
// kernel: maxpool2d_with_indices.1
= control target key start
LH: loop header
LB: loop body
LE: loop exit
PB: predicated region body
PF: predicated region fallthrough
CT: control target
= control target key end

     0   :  { %s781_s9 = smov 0   ;;  %s783_s10 = smov 0   ;;  %s1208_s0 = inlined_call_operand.vmem [shape: f32[2,16,16,4], index: 0, kind: input, shape index: {}]   ;;  %s1209_s1 = inlined_call_operand.vmem [shape: f32[2,8,8,4], index: 1, kind: output, shape index: {0}]   ;;  %s1210_s2 = inlined_call_operand.vmem [shape: s32[2,8,8,4], index: 2, kind: output, shape index: {1}]  }
   0x1   :  { %s785_s11 = smov 0  }
   0x2 LB: > { %s32_s12 = sadd.s32 1, %s759_s10  ;;  %p673_p0 = scmp.ge.s32.totalorder %s763_s11, 1  ;;  %s763_s11 = sphi %s785_s11, %s13_s11   ;;  %s759_s10 = sphi %s783_s10, %s1281_s10   ;;  %s755_s9 = sphi %s781_s9, %s1280_s9  }
   0x3   : > { %p34_p1 = scmp.ge.s32.totalorder %s32_s12, 2  ;;  %p155_p2 = scmp.lt.s32.totalorder %s763_s11, 3 }
   0x5   : > { %s1283_s12 = smov (%p34_p1, %s32_s12), 0  ;;  %p156_p3 = pnand %p673_p0, %p155_p2 }
   0x6   : > { %p205_p4 = scmp.lt.s32.totalorder (!%p156_p3), %s755_s9, 1  ;;  %v445_v0 = vlaneseq (!%p156_p3)  ;;  %vm1211_vm0 = vcmask (!%p156_p3), 31744   ;;  %v765_v24 = vmov (!%p156_p3), 0  }
   0x7   : > { %159 = sbr.rel (%p156_p3) target bundleno = 55 (0x37), region = 24 }
   0x8   : > { %v446_v1 = vshrl.u32 (!%p156_p3), %v445_v0, 7 }
   0xa   : > { %v807_v2 = vmul.u32 (!%p156_p3), 2, %v446_v1 }
   0xc   : > { %v831_v16 = vadd.s32 (!%p156_p3), 32, %v807_v2  ;;  %v468_v35 = vadd.s32 (!%p156_p3), 128, %v807_v2  ;;  %v470_v49 = vadd.s32 (!%p156_p3), 192, %v807_v2 }
   0xe   : > { %s1285_s9 = smov (!%p205_p4, %s755_s9), 1 }
   0xf   : > { %s713_s13 = sshll.u32 %s1285_s9, 8  ;;  %s714_s17 = sshll.u32 %s1285_s9, 6 }
  0x10   : > { %s805_s16 = scalar_lea.vmem %s1208_s0, %s713_s13  ;;  %s875_s20 = scalar_lea.vmem %s1209_s1, %s714_s17 }
  0x11   : > { %v244_v3 = vld [vmem:[%s805_s16] ss:$2 sm:$0xff]  ;;  %v687_v4 = vld [vmem:[%s805_s16 + $0x1] ss:$2 sm:$0xff]  ;;  %v695_v5 = vld [vmem:[%s805_s16 + $0x10] ss:$2 sm:$0xff]  ;;  %s1003_s23 = scalar_lea.vmem %s1210_s2, %s714_s17 }
  0x12   : > { %vm275_vm1 = vcmp.gt.f32.partialorder %v687_v4, %v244_v3  ;;  %vm283_vm2 = vcmp.ne.f32.partialorder %v687_v4, %v687_v4  ;;  %v703_v6 = vld [vmem:[%s805_s16 + $0x11] ss:$2 sm:$0xff]  ;;  %v680_v7 = vld [vmem:[%s805_s16 + $0x20] ss:$2 sm:$0xff]  ;;  %v688_v8 = vld [vmem:[%s805_s16 + $0x21] ss:$2 sm:$0xff]  ;;  %vm339_vm4 = vcmp.ne.f32.partialorder %v695_v5, %v695_v5 }
  0x13   : > { %vm815_vm3 = vmor %vm275_vm1, %vm283_vm2  ;;  %vm276_vm5 = vcmp.gt.f32.partialorder %v688_v8, %v680_v7  ;;  %vm284_vm6 = vcmp.ne.f32.partialorder %v688_v8, %v688_v8  ;;  %v696_v10 = vld [vmem:[%s805_s16 + $0x30] ss:$2 sm:$0xff]  ;;  %v704_v11 = vld [vmem:[%s805_s16 + $0x31] ss:$2 sm:$0xff]  ;;  %vm395_vm7 = vcmp.ne.f32.partialorder %v703_v6, %v703_v6 }
  0x14   : > { %v307_v12 = vsel %vm815_vm3, %v687_v4, %v244_v3  ;;  %vm824_vm8 = vmor %vm276_vm5, %vm284_vm6  ;;  %vm340_vm9 = vcmp.ne.f32.partialorder %v696_v10, %v696_v10  ;;  %v681_v14 = vld [vmem:[%s805_s16 + $0x40] ss:$2 sm:$0xff]  ;;  %v689_v15 = vld [vmem:[%s805_s16 + $0x41] ss:$2 sm:$0xff]  ;;  %vm396_vm15 = vcmp.ne.f32.partialorder %v704_v11, %v704_v11  ;;  %v299_v25 = vsel %vm815_vm3, 1, %v765_v24 }
  0x15   : > { %vm331_vm10 = vcmp.gt.f32.partialorder %v695_v5, %v307_v12  ;;  %v308_v17 = vsel %vm824_vm8, %v688_v8, %v680_v7  ;;  %vm277_vm11 = vcmp.gt.f32.partialorder %v689_v15, %v681_v14  ;;  %vm285_vm12 = vcmp.ne.f32.partialorder %v689_v15, %v689_v15  ;;  %v697_v18 = vld [vmem:[%s805_s16 + $0x50] ss:$2 sm:$0xff]  ;;  %v837_v19 = vld [vmem:[%s805_s16 + $0x51] ss:$2 sm:$0xff]  ;;  %v682_v20 = vld [vmem:[%s805_s16 + $0x60] ss:$2 sm:$0xff] }
  0x16   : > { %vm841_vm13 = vmor %vm331_vm10, %vm339_vm4  ;;  %vm332_vm14 = vcmp.gt.f32.partialorder %v696_v10, %v308_v17  ;;  %vm341_vm1 = vcmp.ne.f32.partialorder %v697_v18, %v697_v18  ;;  %v690_v22 = vld [vmem:[%s805_s16 + $0x61] ss:$2 sm:$0xff]  ;;  %v847_v23 = vld [vmem:[%s805_s16 + $0x70] ss:$2 sm:$0xff]  ;;  %vm397_vm4 = vcmp.ne.f32.partialorder %v837_v19, %v837_v19  ;;  %v868_v30 = vsel %vm824_vm8, 1, %v765_v24 }
  0x17   : > { %v363_v26 = vsel %vm841_vm13, %v695_v5, %v307_v12  ;;  %vm855_vm2 = vmor %vm332_vm14, %vm340_vm9  ;;  %vm278_vm5 = vcmp.gt.f32.partialorder %v690_v22, %v682_v20  ;;  %v862_v28 = vld [vmem:[%s805_s16 + $0x71] ss:$2 sm:$0xff]  ;;  %v683_v29 = vld [vmem:[%s805_s16 + $0x80] ss:$2 sm:$0xff]  ;;  %vm286_vm9 = vcmp.ne.f32.partialorder %v690_v22, %v690_v22  ;;  %v355_v39 = vsel %vm841_vm13, 16, %v299_v25 }
  0x18   : > { %vm387_vm3 = vcmp.gt.f32.partialorder %v703_v6, %v363_v26  ;;  %v364_v31 = vsel %vm855_vm2, %v696_v10, %v308_v17  ;;  %vm881_vm6 = vmor %vm277_vm11, %vm285_vm12  ;;  %v691_v33 = vld [vmem:[%s805_s16 + $0x81] ss:$2 sm:$0xff]  ;;  %v699_v34 = vld [vmem:[%s805_s16 + $0x90] ss:$2 sm:$0xff]  ;;  %v356_v57 = vsel %vm855_vm2, 16, %v868_v30  ;;  %vm1234_vm2 = vcmp.ne.f32.partialorder %v847_v23, %v847_v23 }
  0x19   : > { %vm890_vm10 = vmor %vm387_vm3, %vm395_vm7  ;;  %vm388_vm14 = vcmp.gt.f32.partialorder %v704_v11, %v364_v31  ;;  %v309_v36 = vsel %vm881_vm6, %v689_v15, %v681_v14  ;;  %v899_v37 = vld [vmem:[%s805_s16 + $0x91] ss:$2 sm:$0xff]  ;;  %v684_v38 = vld [vmem:[%s805_s16 + $0xa0] ss:$2 sm:$0xff]  ;;  %vm279_vm3 = vcmp.gt.f32.partialorder %v691_v33, %v683_v29  ;;  %vm287_vm11 = vcmp.ne.f32.partialorder %v691_v33, %v691_v33 }
  0x1a   : > { %v419_v40 = vsel %vm890_vm10, %v703_v6, %v363_v26  ;;  %vm907_vm7 = vmor %vm388_vm14, %vm396_vm15  ;;  %vm333_vm12 = vcmp.gt.f32.partialorder %v697_v18, %v309_v36  ;;  %v692_v42 = vld [vmem:[%s805_s16 + $0xa1] ss:$2 sm:$0xff]  ;;  %v913_v43 = vld [vmem:[%s805_s16 + $0xb0] ss:$2 sm:$0xff]  ;;  %v411_v56 = vsel %vm890_vm10, 17, %v355_v39  ;;  %v301_v8 = vsel %vm881_vm6, 1, %v765_v24 }
  0x1b   : > { %428 = vst.msk [vmem:[%s875_s20] sm:$0xff] %vm1211_vm0, %v419_v40  ;;  %v420_v44 = vsel %vm907_vm7, %v704_v11, %v364_v31  ;;  %vm920_vm13 = vmor %vm333_vm12, %vm341_vm1  ;;  %v927_v46 = vld [vmem:[%s805_s16 + $0xb1] ss:$2 sm:$0xff]  ;;  %v930_v47 = vld [vmem:[%s805_s16 + $0xc0] ss:$2 sm:$0xff]  ;;  %vm288_vm12 = vcmp.ne.f32.partialorder %v692_v42, %v692_v42  ;;  %v472_v4 = vadd.s32 %v807_v2, %v411_v56  ;;  %v412_v7 = vsel %vm907_vm7, 17, %v356_v57 }
  0x1c   : > { %429 = vst.msk [vmem:[%s875_s20 + $0x8] sm:$0xff] %vm1211_vm0, %v420_v44  ;;  %v365_v48 = vsel %vm920_vm13, %v697_v18, %v309_v36  ;;  %vm938_vm1 = vmor %vm278_vm5, %vm286_vm9  ;;  %v693_v50 = vld [vmem:[%s805_s16 + $0xc1] ss:$2 sm:$0xff]  ;;  %v948_v51 = vld [vmem:[%s805_s16 + $0xd0] ss:$2 sm:$0xff]  ;;  %vm1243_vm8 = vcmp.ne.f32.partialorder %v862_v28, %v862_v28  ;;  %v473_v11 = vadd.s32 %v831_v16, %v412_v7  ;;  %v357_v12 = vsel %vm920_vm13, 16, %v301_v8 }
  0x1d   : > { %vm389_vm15 = vcmp.gt.f32.partialorder %v837_v19, %v365_v48  ;;  %v310_v52 = vsel %vm938_vm1, %v690_v22, %v682_v20  ;;  %vm955_vm5 = vmor %vm279_vm3, %vm287_vm11  ;;  %v960_v54 = vld [vmem:[%s805_s16 + $0xd1] ss:$2 sm:$0xff]  ;;  %v686_v55 = vld [vmem:[%s805_s16 + $0xe0] ss:$2 sm:$0xff]  ;;  %vm1247_vm6 = vcmp.ne.f32.partialorder %v899_v37, %v899_v37  ;;  %v466_v16 = vadd.s32 64, %v807_v2 }
  0x1e   : > { %vm971_vm9 = vmor %vm389_vm15, %vm397_vm4  ;;  %vm334_vm11 = vcmp.gt.f32.partialorder %v847_v23, %v310_v52  ;;  %v311_v59 = vsel %vm955_vm5, %v691_v33, %v683_v29  ;;  %v694_v60 = vld [vmem:[%s805_s16 + $0xe1] ss:$2 sm:$0xff]  ;;  %v981_v61 = vld [vmem:[%s805_s16 + $0xf0] ss:$2 sm:$0xff]  ;;  %vm1251_vm13 = vcmp.ne.f32.partialorder %v913_v43, %v913_v43  ;;  %v467_v20 = vadd.s32 96, %v807_v2 }
  0x1f   : > { %v421_v62 = vsel %vm971_vm9, %v837_v19, %v365_v48  ;;  %vm989_vm4 = vmor %vm334_vm11, %vm1234_vm2  ;;  %vm335_vm15 = vcmp.gt.f32.partialorder %v699_v34, %v311_v59  ;;  %v996_v0 = vld [vmem:[%s805_s16 + $0xf1] ss:$2 sm:$0xff]  ;;  %vm1237_vm11 = vcmp.ne.f32.partialorder %v699_v34, %v699_v34  ;;  %vm290_vm3 = vcmp.ne.f32.partialorder %v694_v60, %v694_v60 }
  0x20   : > { %430 = vst.msk [vmem:[%s875_s20 + $0x10] sm:$0xff] %vm1211_vm0, %v421_v62  ;;  %v366_v1 = vsel %vm989_vm4, %v847_v23, %v310_v52  ;;  %vm1011_vm2 = vmor %vm335_vm15, %vm1237_vm11  ;;  %vm1240_vm0 = vcmp.gt.f32.partialorder %v692_v42, %v684_v38  ;;  %vm402_vm11 = vcmp.ne.f32.partialorder %v996_v0, %v996_v0  ;;  %v413_v15 = vsel %vm971_vm9, 17, %v357_v12 }
  0x21   : > { %vm390_vm14 = vcmp.gt.f32.partialorder %v862_v28, %v366_v1  ;;  %v367_v5 = vsel %vm1011_vm2, %v699_v34, %v311_v59  ;;  %vm1025_vm15 = vmor %vm1240_vm0, %vm288_vm12  ;;  %vm1246_vm12 = vcmask 31744   ;;  %v302_v19 = vsel %vm938_vm1, 1, %v765_v24 }
  0x22   : > { %vm1039_vm10 = vmor %vm390_vm14, %vm1243_vm8  ;;  %vm391_vm0 = vcmp.gt.f32.partialorder %v899_v37, %v367_v5  ;;  %v312_v10 = vsel %vm1025_vm15, %v692_v42, %v684_v38  ;;  %480 = vst.msk [vmem:[%s1003_s23] sm:$0xff] %vm1246_vm12, %v472_v4  ;;  %v303_v21 = vsel %vm955_vm5, 1, %v765_v24  ;;  %v474_v25 = vadd.s32 %v466_v16, %v413_v15 }
  0x23   : > { %v422_v13 = vsel %vm1039_vm10, %v862_v28, %v366_v1  ;;  %vm1057_vm8 = vmor %vm391_vm0, %vm1247_vm6  ;;  %vm336_vm7 = vcmp.gt.f32.partialorder %v913_v43, %v312_v10  ;;  %481 = vst.msk [vmem:[%s1003_s23 + $0x8] sm:$0xff] %vm1246_vm12, %v473_v11  ;;  %vm1255_vm6 = vcmp.ne.f32.partialorder %v693_v50, %v693_v50  ;;  %v358_v26 = vsel %vm989_vm4, 16, %v302_v19 }
  0x24   : > { %vm1250_vm14 = vmmov %vm1246_vm12  ;;  %v423_v17 = vsel %vm1057_vm8, %v899_v37, %v367_v5  ;;  %v359_v27 = vsel %vm1011_vm2, 16, %v303_v21  ;;  %vm1259_vm5 = vcmp.gt.f32.partialorder %v694_v60, %v686_v55  ;;  %v414_v30 = vsel %vm1039_vm10, 17, %v358_v26 }
  0x25   : > { %431 = vst.msk [vmem:[%s875_s20 + $0x18] sm:$0xff] %vm1250_vm14, %v422_v13  ;;  %vm1073_vm0 = vmor %vm336_vm7, %vm1251_vm13  ;;  %vm1256_vm7 = vcmp.gt.f32.partialorder %v693_v50, %v930_v47  ;;  %v415_v31 = vsel %vm1057_vm8, 17, %v359_v27  ;;  %vm1262_vm4 = vcmp.ne.f32.partialorder %v927_v46, %v927_v46  ;;  %v475_v34 = vadd.s32 %v467_v20, %v414_v30 }
  0x26   : > { %vm1254_vm9 = vmmov %vm1246_vm12  ;;  %v368_v22 = vsel %vm1073_vm0, %v913_v43, %v312_v10  ;;  %vm1266_vm10 = vcmp.ne.f32.partialorder %v948_v51, %v948_v51  ;;  %v304_v38 = vsel %vm1025_vm15, 1, %v765_v24  ;;  %v469_v39 = vadd.s32 160, %v807_v2 }
  0x27   : > { %432 = vst.msk [vmem:[%s875_s20 + $0x20] sm:$0xff] %vm1254_vm9, %v423_v17  ;;  %vm1094_vm14 = vmor %vm1256_vm7, %vm1255_vm6  ;;  %vm392_vm1 = vcmp.gt.f32.partialorder %v927_v46, %v368_v22  ;;  %vm1270_vm7 = vcmp.ne.f32.partialorder %v981_v61, %v981_v61  ;;  %v476_v42 = vadd.s32 %v468_v35, %v415_v31  ;;  %v360_v43 = vsel %vm1073_vm0, 16, %v304_v38 }
  0x28   : > { %v313_v28 = vsel %vm1094_vm14, %v693_v50, %v930_v47  ;;  %vm1108_vm13 = vmor %vm1259_vm5, %vm290_vm3  ;;  %v305_v44 = vsel %vm1094_vm14, 1, %v765_v24  ;;  %vm1274_vm0 = vcmp.ne.f32.partialorder %v960_v54, %v960_v54 }
  0x29   : > { %vm1119_vm2 = vmor %vm392_vm1, %vm1262_vm4  ;;  %vm337_vm12 = vcmp.gt.f32.partialorder %v948_v51, %v313_v28  ;;  %v314_v33 = vsel %vm1108_vm13, %v694_v60, %v686_v55  ;;  %v306_v50 = vsel %vm1108_vm13, 1, %v765_v24  ;;  %v471_v55 = vadd.s32 224, %v807_v2 }
  0x2a   : > { %vm1265_vm3 = vmmov %vm1254_vm9  ;;  %v424_v36 = vsel %vm1119_vm2, %v927_v46, %v368_v22  ;;  %vm338_vm9 = vcmp.gt.f32.partialorder %v981_v61, %v314_v33  ;;  %v416_v46 = vsel %vm1119_vm2, 17, %v360_v43 }
  0x2b   : > { %482 = vst.msk [vmem:[%s1003_s23 + $0x10] sm:$0xff] %vm1265_vm3, %v474_v25  ;;  %vm1135_vm8 = vmor %vm337_vm12, %vm1266_vm10  ;;  %v477_v48 = vadd.s32 %v469_v39, %v416_v46 }
  0x2c   : > { %vm1269_vm6 = vmmov %vm1265_vm3  ;;  %v369_v40 = vsel %vm1135_vm8, %v948_v51, %v313_v28  ;;  %v361_v47 = vsel %vm1135_vm8, 16, %v305_v44 }
  0x2d   : > { %433 = vst.msk [vmem:[%s875_s20 + $0x28] sm:$0xff] %vm1269_vm6, %v424_v36  ;;  %vm1152_vm1 = vmor %vm338_vm9, %vm1270_vm7  ;;  %vm393_vm15 = vcmp.gt.f32.partialorder %v960_v54, %v369_v40 }
  0x2e   : > { %vm1273_vm5 = vmmov %vm1265_vm3  ;;  %v370_v45 = vsel %vm1152_vm1, %v981_v61, %v314_v33  ;;  %v362_v53 = vsel %vm1152_vm1, 16, %v306_v50 }
  0x2f   : > { %483 = vst.msk [vmem:[%s1003_s23 + $0x18] sm:$0xff] %vm1273_vm5, %v475_v34  ;;  %vm409_vm4 = vmor %vm393_vm15, %vm1274_vm0  ;;  %vm394_vm14 = vcmp.gt.f32.partialorder %v996_v0, %v370_v45 }
  0x30   : > { %vm1275_vm12 = vmmov %vm1265_vm3  ;;  %v425_v51 = vsel %vm409_vm4, %v960_v54, %v369_v40  ;;  %v417_v52 = vsel %vm409_vm4, 17, %v361_v47 }
  0x31   : > { %484 = vst.msk [vmem:[%s1003_s23 + $0x20] sm:$0xff] %vm1275_vm12, %v476_v42  ;;  %vm410_vm2 = vmor %vm394_vm14, %vm402_vm11  ;;  %v478_v57 = vadd.s32 %v470_v49, %v417_v52 }
  0x32   : > { %434 = vst.msk [vmem:[%s875_s20 + $0x30] sm:$0xff] %vm1265_vm3, %v425_v51  ;;  %v426_v56 = vsel %vm410_vm2, %v996_v0, %v370_v45  ;;  %vm1276_vm10 = vmmov %vm1265_vm3  ;;  %v418_v24 = vsel %vm410_vm2, 17, %v362_v53 }
  0x33   : > { %485 = vst.msk [vmem:[%s1003_s23 + $0x28] sm:$0xff] %vm1276_vm10, %v477_v48  ;;  %vm1277_vm13 = vmmov %vm1265_vm3  ;;  %v479_v54 = vadd.s32 %v471_v55, %v418_v24 }
  0x34   : > { %435 = vst.msk [vmem:[%s875_s20 + $0x38] sm:$0xff] %vm1277_vm13, %v426_v56  ;;  %vm1278_vm8 = vmmov %vm1265_vm3 }
  0x35   : > { %486 = vst.msk [vmem:[%s1003_s23 + $0x30] sm:$0xff] %vm1278_vm8, %v478_v57  ;;  %vm1279_vm11 = vmmov %vm1265_vm3 }
  0x36   : > { %487 = vst.msk [vmem:[%s1003_s23 + $0x38] sm:$0xff] %vm1279_vm11, %v479_v54 }
  0x37 PF: > { %s13_s11 = sadd.s32 1, %s763_s11   ;;  %s1280_s9 = smov %s759_s10 }
  0x38   : > { %p10_p5 = scmp.ge.s32.totalorder %s13_s11, 4   ;;  %s1281_s10 = smov %s1283_s12 }
  0x3a   :  { %12 = sbr.rel (!%p10_p5) target bundleno = 2 (0x2), region = 97 }

</bundles_post_ra>
